<compile_context>
chip_gen: v5e
topology: v5e:2x2
jax: 0.10.0
libtpu: 0.0.40
codegen_flags: <defaults>
</compile_context>

<pallas_src>
import jax
import jax.numpy as jnp
from jax import lax
from jax.experimental import pallas as pl
from jax.experimental.pallas import tpu as pltpu

IN_FEATURES = 8
OUT_FEATURES = 2
W_PAD = 8           # weight rows padded to a full sublane group
MAX_TB = 16384      # batch-tile cap (multiple of 128)


def _round_up(x, m):
    return ((x + m - 1) // m) * m


def toy_agent_kernel(w_ref, x_ref, o_ref):
    # w_ref : VMEM (8, 8)  f32 -- rows 0..1 hold the real (out, in) weights.
    # x_ref : VMEM (TB, 8) f32 -- native batch-major tile straight from HBM.
    # o_ref : VMEM (2, TB) f32 -- class-major, lane-dense output tile.

    # logits[j, b] = sum_k w[j, k] * x[b, k]  -- one MXU op, (8, TB) result.
    logits = lax.dot_general(
        w_ref[...], x_ref[...],
        dimension_numbers=(((1,), (1,)), ((), ())),
        preferred_element_type=jnp.float32,
    )

    l0 = logits[0:1, :]
    l1 = logits[1:2, :]
    # 2-way log-sum-exp, softplus form: 2 transcendentals per element,
    # numerically stable (exp argument <= 0).
    lse = jnp.maximum(l0, l1) + jnp.log1p(jnp.exp(-jnp.abs(l0 - l1)))
    o_ref[...] = (logits[0:OUT_FEATURES, :] - lse).astype(o_ref.dtype)


def toy_agent_forward(x, weight, *, max_tb=MAX_TB):
    """x: (B, 8) f32, weight: (2, 8) f32 -> log_softmax(x @ weight.T), (B, 2)."""
    B = x.shape[0]
    x = x.astype(jnp.float32)

    if B <= max_tb:
        # Single block covering the whole (sublane-rounded) batch.
        Bp = _round_up(B, 8)
        TB = Bp
    else:
        # Lane-multiple tiles; the partial edge block is handled by Pallas
        # masked stores (no explicit padding / extra HBM round trip).
        Bp = B
        TB = max_tb

    if Bp != B:
        # Only hit when B is small and not a multiple of 8 (e.g. B=2): a few
        # zero rows, negligible cost, keeps the matmul operand sublane-aligned.
        x = jnp.pad(x, ((0, Bp - B), (0, 0)))

    # Pad the (2, 8) weight to a sublane-aligned (8, 8) block (once, tiny).
    w_pad = jnp.zeros((W_PAD, IN_FEATURES), jnp.float32)
    w_pad = w_pad.at[:OUT_FEATURES].set(weight.astype(jnp.float32))

    grid = (pl.cdiv(Bp, TB),)

    out_cm = pl.pallas_call(
        toy_agent_kernel,
        out_shape=jax.ShapeDtypeStruct((OUT_FEATURES, Bp), jnp.float32),
        grid=grid,
        in_specs=[
            pl.BlockSpec((W_PAD, IN_FEATURES), lambda i: (0, 0)),  # weights (resident)
            pl.BlockSpec((TB, IN_FEATURES), lambda i: (i, 0)),     # native x tile
        ],
        out_specs=pl.BlockSpec((OUT_FEATURES, TB), lambda i: (0, i)),
        compiler_params=pltpu.CompilerParams(
            dimension_semantics=("parallel",),
        ),
        cost_estimate=pl.CostEstimate(
            flops=2 * Bp * IN_FEATURES * OUT_FEATURES,
            transcendentals=2 * Bp,
            bytes_accessed=4 * (Bp * (IN_FEATURES + OUT_FEATURES)
                                + W_PAD * IN_FEATURES),
        ),
    )(w_pad, x)

    # Tiny (2, B) -> (B, 2) flip; kernel-side layout stays lane-dense.
    return out_cm[:, :B].T


def init_params(key):
    # Mimic PyTorch default Linear init: uniform(-1/sqrt(fan_in), 1/sqrt(fan_in)).
    bound = 1.0 / jnp.sqrt(jnp.float32(IN_FEATURES))
    return jax.random.uniform(
        key, (OUT_FEATURES, IN_FEATURES), minval=-bound, maxval=bound,
        dtype=jnp.float32,
    )


def _reference(x, weight):
    return jax.nn.log_softmax(x @ weight.T, axis=1)


if __name__ == "__main__":
    key = jax.random.PRNGKey(0)
    k_w, k_x, k_x2 = jax.random.split(key, 3)

    weight = init_params(k_w)

    # Small case (batch=2, matches the PyTorch test usage).
    batch = 2
    x = jax.random.normal(k_x, (batch, IN_FEATURES), dtype=jnp.float32)
    out = jax.block_until_ready(toy_agent_forward(x, weight))
    assert out.shape == (batch, OUT_FEATURES)
    assert jnp.allclose(out, _reference(x, weight), atol=1e-5, rtol=1e-5)

    # Larger case: single full-array block, no padding (grid = 1).
    batch2 = 640
    x2 = jax.random.normal(k_x2, (batch2, IN_FEATURES), dtype=jnp.float32)
    out2 = jax.block_until_ready(toy_agent_forward(x2, weight))
    assert out2.shape == (batch2, OUT_FEATURES)
    assert jnp.allclose(out2, _reference(x2, weight), atol=1e-5, rtol=1e-5)

    # Same data forced through the tiled "parallel" grid + masked edge block.
    out3 = jax.block_until_ready(toy_agent_forward(x2, weight, max_tb=256))
    assert out3.shape == (batch2, OUT_FEATURES)
    assert jnp.allclose(out3, _reference(x2, weight), atol=1e-5, rtol=1e-5)

    print("KERNEL_OK")
</pallas_src>

<mosaic_0001>
module attributes {stable_mosaic.version = 11 : i64} {
  func.func @toy_agent_kernel(%arg0: i32, %arg1: memref<8x8xf32, #tpu.memory_space<vmem>>, %arg2: memref<8x8xf32, #tpu.memory_space<vmem>>, %arg3: memref<2x8xf32, #tpu.memory_space<vmem>>) attributes {dimension_semantics = [#tpu.dimension_semantics<parallel>], iteration_bounds = array<i64: 1>, scalar_prefetch = 0 : i64, scratch_operands = 0 : i64, tpu.core_type = #tpu.core_type<tc>, window_params = [{pipeline_mode = #tpu.pipeline_mode<synchronous>, transform_indices = @transform_0, window_bounds = array<i64: 8, 8>}, {transform_indices = @transform_1, window_bounds = array<i64: 8, 8>}, {transform_indices = @transform_2, window_bounds = array<i64: 2, 8>}]} {
    %c0 = arith.constant 0 : index
    %c0_0 = arith.constant 0 : index
    %0 = vector.load %arg1[%c0, %c0_0] : memref<8x8xf32, #tpu.memory_space<vmem>>, vector<8x8xf32>
    %c0_1 = arith.constant 0 : index
    %c0_2 = arith.constant 0 : index
    %1 = vector.load %arg2[%c0_1, %c0_2] : memref<8x8xf32, #tpu.memory_space<vmem>>, vector<8x8xf32>
    %cst = arith.constant dense<0.000000e+00> : vector<8x8xf32>
    %2 = tpu.matmul %0, %1, %cst {dimension_numbers = #tpu.dot_dimension_numbers<[1], [1], [0], [0], [0, 0, 1, 0], [], []>} : vector<8x8xf32>, vector<8x8xf32>, vector<8x8xf32> -> vector<8x8xf32>
    %3 = vector.extract_strided_slice %2 {offsets = [0, 0], sizes = [1, 8], strides = [1, 1]} : vector<8x8xf32> to vector<1x8xf32>
    %4 = vector.extract_strided_slice %2 {offsets = [1, 0], sizes = [1, 8], strides = [1, 1]} : vector<8x8xf32> to vector<1x8xf32>
    %5 = arith.maximumf %3, %4 : vector<1x8xf32>
    %6 = arith.subf %3, %4 : vector<1x8xf32>
    %7 = math.absf %6 : vector<1x8xf32>
    %cst_3 = arith.constant 0.000000e+00 : f32
    %8 = vector.broadcast %cst_3 : f32 to vector<1x8xf32>
    %9 = arith.subf %8, %7 : vector<1x8xf32>
    %10 = math.exp %9 : vector<1x8xf32>
    %11 = math.log1p %10 : vector<1x8xf32>
    %12 = arith.addf %5, %11 : vector<1x8xf32>
    %13 = vector.extract_strided_slice %2 {offsets = [0, 0], sizes = [2, 8], strides = [1, 1]} : vector<8x8xf32> to vector<2x8xf32>
    %14 = vector.broadcast %12 : vector<1x8xf32> to vector<2x8xf32>
    %15 = arith.subf %13, %14 : vector<2x8xf32>
    %c0_4 = arith.constant 0 : index
    %c0_5 = arith.constant 0 : index
    %16 = vector.load %arg3[%c0_4, %c0_5] : memref<2x8xf32, #tpu.memory_space<vmem>>, vector<2x8xf32>
    tpu.vector_store %arg3[%c0_4, %c0_5], %15 {strides = array<i32>} : memref<2x8xf32, #tpu.memory_space<vmem>>, vector<2x8xf32>,
    return
  }
  func.func @transform_0(%arg0: i32) -> (i32, i32) {
    %c0_i32 = arith.constant 0 : i32
    %c0_i32_0 = arith.constant 0 : i32
    %c0_i32_1 = arith.constant 0 : i32
    return %c0_i32, %c0_i32_0 : i32, i32
  }
  func.func @transform_1(%arg0: i32) -> (i32, i32) {
    %c0_i32 = arith.constant 0 : i32
    %c0_i32_0 = arith.constant 0 : i32
    return %arg0, %c0_i32 : i32, i32
  }
  func.func @transform_2(%arg0: i32) -> (i32, i32) {
    %c0_i32 = arith.constant 0 : i32
    %c0_i32_0 = arith.constant 0 : i32
    return %c0_i32, %arg0 : i32, i32
  }
}

</mosaic_0001>

<bundles_post_ra>
// kernel: tpu_custom_call.1
= control target key start
LH: loop header
LB: loop body
LE: loop exit
PB: predicated region body
PF: predicated region fallthrough
CT: control target
= control target key end

     0   :  { %7 = vsyncpa [#allocation3], 0  ;;  %s224_s0 = inlined_call_operand.hbm [shape: f32[8,8], index: 0, kind: input, shape index: {}]   ;;  %s225_s1 = inlined_call_operand.hbm [shape: f32[8,8], index: 1, kind: input, shape index: {}]   ;;  %s226_s2 = inlined_call_operand.hbm [shape: f32[2,8], index: 2, kind: output, shape index: {}]  }
   0x1   :  { %8 = vsyncpa [#allocation6], 0 }
   0x2   :  { %9 = vsyncpa [#allocation4], 0  ;;  %s15_s11 = sshll.u32 %s224_s0, 4  ;;  %s197_s12 = smov [#allocation2]   ;;  %s16_s11 = int_to_ptr.hbm [resolvable:$true] %s15_s11 }
   0x3   :  { %s17_s13 = sshll.u32 %s197_s12, 4  ;;  %s26_s16 = sshll.u32 %s225_s1, 4  ;;  %s18_s13 = int_to_ptr.vmem [resolvable:$true] %s17_s13  ;;  %s27_s16 = int_to_ptr.hbm [resolvable:$true] %s26_s16 }
   0x4   :  { %20 = dma.hbm_to_vmem [thread:$0]  %s16_s11, 128, %s18_s13, [#allocation3]  }
   0x5   :  { %s198_s17 = smov [#allocation5]  }
   0x6   :  { %s28_s18 = sshll.u32 %s198_s17, 4  ;;  %s29_s18 = int_to_ptr.vmem [resolvable:$true] %s28_s18 }
   0x7   :  { %31 = dma.hbm_to_vmem [thread:$0]  %s27_s16, 128, %s29_s18, [#allocation6]  }
   0x8   :  { %191 = dma.done.wait [#allocation3], 128  }
   0x9   :  { %192 = vsyncadd [#allocation3], 4294967168 }
   0xa   :  { %193 = dma.done.wait [#allocation6], 128  }
   0xb   :  { %194 = vsyncadd [#allocation6], 4294967168  ;;  %vm42_vm0 = vcmask 64512   ;;  %v41_v0 = vld [vmem:[#allocation5] sm:$0xff]  ;;  %v40_v1 = vld [vmem:[#allocation2] sm:$0xff]  ;;  %s199_s0 = smov [#allocation7]  }
   0xc   :  { %110 = vmatpush.xpose.msk.msra.mxu0 %vm42_vm0, %v41_v0  ;;  %s97_s1 = sshll.u32 %s199_s0, 4  ;;  %s99_s21 = sshll.u32 %s226_s2, 4  ;;  %vm90_vm2 = vcmask 58368   ;;  %s98_s1 = int_to_ptr.vmem [resolvable:$true] %s97_s1  ;;  %s100_s21 = int_to_ptr.hbm [resolvable:$true] %s99_s21 }
   0xf   :  { %111 = vmatmul.msk.f32.vlgmr.msra.gmra.mxu0 %vm42_vm0, %v40_v1 }
  0x8c   :  { %v66_v2 = vpop.f32.mrf.mxu0 }
  0x8d   :  { %v70_v3 = vrot.slane %v66_v2, 1 }
  0x8f   :  { %v73_v4 = vsub.f32 %v66_v2, %v70_v3  ;;  %v72_v16 = vmax.f32 %v66_v2, %v70_v3 }
  0x91   :  { %v74_v5 = vand.u32 2147483647, %v73_v4 }
  0x93   :  { %v75_v6 = vsub.f32 0.0, %v74_v5 }
  0x95   :  { %v76_v7 = vmul.f32 1.442695, %v75_v6 }
  0x97   :  { %115 = vpow2.f32 %v76_v7 }
  0x9d   :  { %v116_v8 = vpop.eup %115 }
  0x9e   :  { %v78_v9 = vadd.f32 1.0, %v116_v8  ;;  %v81_v10 = vmul.f32 -0.5, %v116_v8  ;;  %v84_v12 = vand.u32 2147483647, %v116_v8 }
  0xa0   :  { %117 = vlog2.f32 %v78_v9  ;;  %v82_v11 = vadd.f32 1.0, %v81_v10  ;;  %vm85_vm1 = vcmp.lt.f32.partialorder %v84_v12, 0.0004427343 }
  0xa2   :  { %v83_v15 = vmul.f32 %v116_v8, %v82_v11 }
  0xa6   :  { %v118_v13 = vpop.eup %117 }
  0xa7   :  { %v80_v14 = vmul.f32 0.6931472, %v118_v13 }
  0xa9   :  { %v86_v17 = vsel %vm85_vm1, %v83_v15, %v80_v14 }
  0xaa   :  { %v87_v18 = vadd.f32 %v86_v17, %v72_v16 }
  0xac   :  { %v88_v19 = vperm.slane %v87_v18, 0 }
  0xae   :  { %v89_v20 = vsub.f32 %v66_v2, %v88_v19 }
  0xb0   :  { %91 = vst.msk [vmem:[#allocation7] sm:$0x3] %vm90_vm2, %v89_v20 }
  0xb1   :  { %102 = dma.vmem_to_hbm [thread:$0]  %s98_s1, 32, %s100_s21, [#allocation4]  }
  0xb2   :  { %195 = dma.done.wait [#allocation4], 32  }
  0xb3   :  { %196 = vsyncadd [#allocation4], 4294967264 }
  0xb4   :  { %107 = vsyncpa [#allocation3], 1 }
  0xb5   :  { %108 = vsyncpa [#allocation6], 1 }
  0xb6   :  { %109 = vsyncpa [#allocation4], 1 }

</bundles_post_ra>
